<compile_context>
chip_gen: v6e
topology: v6e:2x2x1
jax: 0.10.0
libtpu: 0.0.40
codegen_flags: <defaults>
</compile_context>

<pallas_src>
import functools

import jax
import jax.numpy as jnp
from jax.experimental import pallas as pl
from jax.experimental.pallas import tpu as pltpu

LN_EPS = 1e-5  # nn.LayerNorm default
_INV_SQRT2 = 0.7071067811865476


def _resblock_kernel(x_ref, gamma_ref, beta_ref, w1_ref, b1_ref, w2_ref, b2_ref,
                     o_ref):
    # (tm, C) tile of tokens; LayerNorm / GELU math in f32.
    x = x_ref[...].astype(jnp.float32)

    # ---- LayerNorm over the channel (lane) axis ----
    mean = jnp.mean(x, axis=-1, keepdims=True)
    centered = x - mean
    var = jnp.mean(centered * centered, axis=-1, keepdims=True)
    xn = centered * jax.lax.rsqrt(var + LN_EPS)
    xn = xn * gamma_ref[...] + beta_ref[...]          # gamma/beta pre-cast to f32

    # ---- proj: Linear -> exact-erf GELU (PyTorch nn.GELU default) -> Linear ----
    # MXU operands at native weight dtype, f32 accumulation.
    h = jnp.dot(xn.astype(w1_ref.dtype), w1_ref[...],
                preferred_element_type=jnp.float32) + b1_ref[...]
    h = 0.5 * h * (1.0 + jax.lax.erf(h * _INV_SQRT2))
    y = jnp.dot(h.astype(w2_ref.dtype), w2_ref[...],
                preferred_element_type=jnp.float32) + b2_ref[...]

    # ---- residual: normalized x + proj(normalized x) ----
    o_ref[...] = (xn + y).astype(o_ref.dtype)


def _round_up(n, m):
    return (n + m - 1) // m * m


def _choose_tm_cap(C, w_itemsize, x_itemsize, tm_max=1024,
                   vmem_budget=40 * 1024 * 1024):
    """Largest row tile (multiple of 8) that fits the VMEM budget."""
    # Two (C, C) weights + four (1, C) f32 vectors, double-buffered by the pipeline.
    weight_bytes = 2 * 2 * C * C * w_itemsize + 4 * 2 * C * 4
    # Per row: input + output tiles (double-buffered) + ~4 f32 live intermediates.
    per_row = 2 * 2 * C * x_itemsize + 4 * C * 4
    avail = max(vmem_budget - weight_bytes, per_row * 8)
    return int(max(8, min(tm_max, (avail // per_row) // 8 * 8)))


def _pick_divisor_tm(T, tm_cap):
    """Largest multiple-of-8 divisor of T that is <= tm_cap (avoids a pad copy)."""
    start = min(tm_cap, T) // 8 * 8
    for cand in range(start, 0, -8):
        if T % cand == 0:
            return cand
    return None


@functools.partial(jax.jit, static_argnames=("tm",))
def simple_res_block(x, gamma, beta, w1, b1, w2, b2, *, tm=None):
    """x: (B, S, C). Weights stored as (C_in, C_out): y = x @ w + b (== x @ W_pt.T + b)."""
    B, S, C = x.shape
    T = B * S
    if tm is None:
        tm_cap = _choose_tm_cap(C, jnp.dtype(w1.dtype).itemsize,
                                jnp.dtype(x.dtype).itemsize)
        tm = _pick_divisor_tm(T, tm_cap) or min(tm_cap, _round_up(T, 8))

    Tp = _round_up(T, tm)
    x2d = x.reshape(T, C)
    if Tp != T:
        # Zero-padded rows are well-defined under LayerNorm (eps > 0) and sliced off.
        x2d = jnp.pad(x2d, ((0, Tp - T), (0, 0)))

    # Cast the small per-channel params to f32 once here (not per grid step).
    gamma2 = gamma.astype(jnp.float32).reshape(1, C)
    beta2 = beta.astype(jnp.float32).reshape(1, C)
    b1_2 = b1.astype(jnp.float32).reshape(1, C)
    b2_2 = b2.astype(jnp.float32).reshape(1, C)

    row_spec = pl.BlockSpec((tm, C), lambda i: (i, 0))
    vec_spec = pl.BlockSpec((1, C), lambda i: (0, 0))
    mat_spec = pl.BlockSpec((C, C), lambda i: (0, 0))

    out2d = pl.pallas_call(
        _resblock_kernel,
        out_shape=jax.ShapeDtypeStruct((Tp, C), x.dtype),
        grid_spec=pltpu.PrefetchScalarGridSpec(
            num_scalar_prefetch=0,
            grid=(Tp // tm,),
            in_specs=[row_spec, vec_spec, vec_spec, mat_spec, vec_spec, mat_spec,
                      vec_spec],
            out_specs=row_spec,
        ),
        compiler_params=pltpu.CompilerParams(
            dimension_semantics=("parallel",),
            vmem_limit_bytes=48 * 1024 * 1024,
        ),
    )(x2d, gamma2, beta2, w1, b1_2, w2, b2_2)

    if Tp != T:
        out2d = out2d[:T]
    return out2d.reshape(B, S, C)


def _reference(x, gamma, beta, w1, b1, w2, b2):
    mean = jnp.mean(x, axis=-1, keepdims=True)
    var = jnp.mean((x - mean) ** 2, axis=-1, keepdims=True)
    xn = (x - mean) / jnp.sqrt(var + LN_EPS) * gamma + beta
    h = jax.nn.gelu(xn @ w1 + b1, approximate=False)
    return xn + (h @ w2 + b2)


if __name__ == "__main__":
    # Small demo shapes: channels on a lane-dense 128 axis, token count (2*9=18)
    # deliberately not a multiple of 8 to exercise the padding fallback.
    B, S, C = 2, 9, 128
    key = jax.random.PRNGKey(0)
    kx, kg, kb, kw1, kb1, kw2, kb2 = jax.random.split(key, 7)

    x = jax.random.normal(kx, (B, S, C), dtype=jnp.float32)

    # Deterministic synthetic parameters matching the module's shapes.
    gamma = 1.0 + 0.1 * jax.random.normal(kg, (C,), dtype=jnp.float32)
    beta = 0.05 * jax.random.normal(kb, (C,), dtype=jnp.float32)
    w1 = jax.random.normal(kw1, (C, C), dtype=jnp.float32) * 0.05
    b1 = jax.random.normal(kb1, (C,), dtype=jnp.float32) * 0.01
    w2 = jax.random.normal(kw2, (C, C), dtype=jnp.float32) * 0.05
    b2 = jax.random.normal(kb2, (C,), dtype=jnp.float32) * 0.01

    out = simple_res_block(x, gamma, beta, w1, b1, w2, b2)
    jax.block_until_ready(out)

    ref = _reference(x, gamma, beta, w1, b1, w2, b2)
    assert out.shape == (B, S, C)
    assert jnp.allclose(out, ref, atol=2e-4, rtol=2e-4), "mismatch vs reference"

    print("KERNEL_OK")
</pallas_src>

<mosaic_0001>
module attributes {stable_mosaic.version = 11 : i64} {
  func.func @_resblock_kernel(%arg0: i32, %arg1: memref<24x128xf32, #tpu.memory_space<vmem>>, %arg2: memref<1x128xf32, #tpu.memory_space<vmem>>, %arg3: memref<1x128xf32, #tpu.memory_space<vmem>>, %arg4: memref<128x128xf32, #tpu.memory_space<vmem>>, %arg5: memref<1x128xf32, #tpu.memory_space<vmem>>, %arg6: memref<128x128xf32, #tpu.memory_space<vmem>>, %arg7: memref<1x128xf32, #tpu.memory_space<vmem>>, %arg8: memref<24x128xf32, #tpu.memory_space<vmem>>) attributes {dimension_semantics = [#tpu.dimension_semantics<parallel>], iteration_bounds = array<i64: 1>, scalar_prefetch = 0 : i64, scratch_operands = 0 : i64, tpu.core_type = #tpu.core_type<tc>, window_params = [{transform_indices = @transform_0, window_bounds = array<i64: 24, 128>}, {pipeline_mode = #tpu.pipeline_mode<synchronous>, transform_indices = @transform_1, window_bounds = array<i64: 1, 128>}, {pipeline_mode = #tpu.pipeline_mode<synchronous>, transform_indices = @transform_2, window_bounds = array<i64: 1, 128>}, {pipeline_mode = #tpu.pipeline_mode<synchronous>, transform_indices = @transform_3, window_bounds = array<i64: 128, 128>}, {pipeline_mode = #tpu.pipeline_mode<synchronous>, transform_indices = @transform_4, window_bounds = array<i64: 1, 128>}, {pipeline_mode = #tpu.pipeline_mode<synchronous>, transform_indices = @transform_5, window_bounds = array<i64: 128, 128>}, {pipeline_mode = #tpu.pipeline_mode<synchronous>, transform_indices = @transform_6, window_bounds = array<i64: 1, 128>}, {transform_indices = @transform_7, window_bounds = array<i64: 24, 128>}]} {
    %c0 = arith.constant 0 : index
    %c0_0 = arith.constant 0 : index
    %0 = vector.load %arg1[%c0, %c0_0] : memref<24x128xf32, #tpu.memory_space<vmem>>, vector<24x128xf32>
    %cst = arith.constant dense<0.000000e+00> : vector<24xf32>
    %1 = vector.multi_reduction <add>, %0, %cst [1] : vector<24x128xf32> to vector<24xf32>
    %2 = vector.shape_cast %1 : vector<24xf32> to vector<24x1xf32>
    %cst_1 = arith.constant 1.280000e+02 : f32
    %3 = vector.broadcast %cst_1 : f32 to vector<24x1xf32>
    %4 = arith.divf %2, %3 : vector<24x1xf32>
    %5 = vector.broadcast %4 : vector<24x1xf32> to vector<24x128xf32>
    %6 = arith.subf %0, %5 : vector<24x128xf32>
    %7 = arith.mulf %6, %6 : vector<24x128xf32>
    %cst_2 = arith.constant dense<0.000000e+00> : vector<24xf32>
    %8 = vector.multi_reduction <add>, %7, %cst_2 [1] : vector<24x128xf32> to vector<24xf32>
    %9 = vector.shape_cast %8 : vector<24xf32> to vector<24x1xf32>
    %cst_3 = arith.constant 1.280000e+02 : f32
    %10 = vector.broadcast %cst_3 : f32 to vector<24x1xf32>
    %11 = arith.divf %9, %10 : vector<24x1xf32>
    %cst_4 = arith.constant 9.99999974E-6 : f32
    %12 = vector.broadcast %cst_4 : f32 to vector<24x1xf32>
    %13 = arith.addf %11, %12 : vector<24x1xf32>
    %14 = math.rsqrt %13 : vector<24x1xf32>
    %15 = vector.broadcast %14 : vector<24x1xf32> to vector<24x128xf32>
    %16 = arith.mulf %6, %15 : vector<24x128xf32>
    %c0_5 = arith.constant 0 : index
    %c0_6 = arith.constant 0 : index
    %17 = vector.load %arg2[%c0_5, %c0_6] : memref<1x128xf32, #tpu.memory_space<vmem>>, vector<1x128xf32>
    %18 = vector.broadcast %17 : vector<1x128xf32> to vector<24x128xf32>
    %19 = arith.mulf %16, %18 : vector<24x128xf32>
    %c0_7 = arith.constant 0 : index
    %c0_8 = arith.constant 0 : index
    %20 = vector.load %arg3[%c0_7, %c0_8] : memref<1x128xf32, #tpu.memory_space<vmem>>, vector<1x128xf32>
    %21 = vector.broadcast %20 : vector<1x128xf32> to vector<24x128xf32>
    %22 = arith.addf %19, %21 : vector<24x128xf32>
    %c0_9 = arith.constant 0 : index
    %c0_10 = arith.constant 0 : index
    %23 = vector.load %arg4[%c0_9, %c0_10] : memref<128x128xf32, #tpu.memory_space<vmem>>, vector<128x128xf32>
    %cst_11 = arith.constant dense<0.000000e+00> : vector<24x128xf32>
    %24 = tpu.matmul %22, %23, %cst_11 {dimension_numbers = #tpu.dot_dimension_numbers<[1], [0], [0], [1], [0, 0, 1, 1], [], []>} : vector<24x128xf32>, vector<128x128xf32>, vector<24x128xf32> -> vector<24x128xf32>
    %c0_12 = arith.constant 0 : index
    %c0_13 = arith.constant 0 : index
    %25 = vector.load %arg5[%c0_12, %c0_13] : memref<1x128xf32, #tpu.memory_space<vmem>>, vector<1x128xf32>
    %26 = vector.broadcast %25 : vector<1x128xf32> to vector<24x128xf32>
    %27 = arith.addf %24, %26 : vector<24x128xf32>
    %cst_14 = arith.constant 5.000000e-01 : f32
    %28 = vector.broadcast %cst_14 : f32 to vector<24x128xf32>
    %29 = arith.mulf %28, %27 : vector<24x128xf32>
    %cst_15 = arith.constant 0.707106769 : f32
    %30 = vector.broadcast %cst_15 : f32 to vector<24x128xf32>
    %31 = arith.mulf %27, %30 : vector<24x128xf32>
    %32 = math.erf %31 : vector<24x128xf32>
    %cst_16 = arith.constant 1.000000e+00 : f32
    %33 = vector.broadcast %cst_16 : f32 to vector<24x128xf32>
    %34 = arith.addf %33, %32 : vector<24x128xf32>
    %35 = arith.mulf %29, %34 : vector<24x128xf32>
    %c0_17 = arith.constant 0 : index
    %c0_18 = arith.constant 0 : index
    %36 = vector.load %arg6[%c0_17, %c0_18] : memref<128x128xf32, #tpu.memory_space<vmem>>, vector<128x128xf32>
    %cst_19 = arith.constant dense<0.000000e+00> : vector<24x128xf32>
    %37 = tpu.matmul %35, %36, %cst_19 {dimension_numbers = #tpu.dot_dimension_numbers<[1], [0], [0], [1], [0, 0, 1, 1], [], []>} : vector<24x128xf32>, vector<128x128xf32>, vector<24x128xf32> -> vector<24x128xf32>
    %c0_20 = arith.constant 0 : index
    %c0_21 = arith.constant 0 : index
    %38 = vector.load %arg7[%c0_20, %c0_21] : memref<1x128xf32, #tpu.memory_space<vmem>>, vector<1x128xf32>
    %39 = vector.broadcast %38 : vector<1x128xf32> to vector<24x128xf32>
    %40 = arith.addf %37, %39 : vector<24x128xf32>
    %41 = arith.addf %22, %40 : vector<24x128xf32>
    %c0_22 = arith.constant 0 : index
    %c0_23 = arith.constant 0 : index
    %42 = vector.load %arg8[%c0_22, %c0_23] : memref<24x128xf32, #tpu.memory_space<vmem>>, vector<24x128xf32>
    tpu.vector_store %arg8[%c0_22, %c0_23], %41 {strides = array<i32>} : memref<24x128xf32, #tpu.memory_space<vmem>>, vector<24x128xf32>,
    return
  }
  func.func @transform_0(%arg0: i32) -> (i32, i32) {
    %c0_i32 = arith.constant 0 : i32
    %c0_i32_0 = arith.constant 0 : i32
    return %arg0, %c0_i32 : i32, i32
  }
  func.func @transform_1(%arg0: i32) -> (i32, i32) {
    %c0_i32 = arith.constant 0 : i32
    %c0_i32_0 = arith.constant 0 : i32
    %c0_i32_1 = arith.constant 0 : i32
    return %c0_i32, %c0_i32_0 : i32, i32
  }
  func.func @transform_2(%arg0: i32) -> (i32, i32) {
    %c0_i32 = arith.constant 0 : i32
    %c0_i32_0 = arith.constant 0 : i32
    %c0_i32_1 = arith.constant 0 : i32
    return %c0_i32, %c0_i32_0 : i32, i32
  }
  func.func @transform_3(%arg0: i32) -> (i32, i32) {
    %c0_i32 = arith.constant 0 : i32
    %c0_i32_0 = arith.constant 0 : i32
    %c0_i32_1 = arith.constant 0 : i32
    return %c0_i32, %c0_i32_0 : i32, i32
  }
  func.func @transform_4(%arg0: i32) -> (i32, i32) {
    %c0_i32 = arith.constant 0 : i32
    %c0_i32_0 = arith.constant 0 : i32
    %c0_i32_1 = arith.constant 0 : i32
    return %c0_i32, %c0_i32_0 : i32, i32
  }
  func.func @transform_5(%arg0: i32) -> (i32, i32) {
    %c0_i32 = arith.constant 0 : i32
    %c0_i32_0 = arith.constant 0 : i32
    %c0_i32_1 = arith.constant 0 : i32
    return %c0_i32, %c0_i32_0 : i32, i32
  }
  func.func @transform_6(%arg0: i32) -> (i32, i32) {
    %c0_i32 = arith.constant 0 : i32
    %c0_i32_0 = arith.constant 0 : i32
    %c0_i32_1 = arith.constant 0 : i32
    return %c0_i32, %c0_i32_0 : i32, i32
  }
  func.func @transform_7(%arg0: i32) -> (i32, i32) {
    %c0_i32 = arith.constant 0 : i32
    %c0_i32_0 = arith.constant 0 : i32
    return %arg0, %c0_i32 : i32, i32
  }
}

</mosaic_0001>

<bundles_post_ra>
// kernel: simple_res_block.1
= control target key start
LH: loop header
LB: loop body
LE: loop exit
PB: predicated region body
PF: predicated region fallthrough
CT: control target
= control target key end

     0   :  { %12 = vsyncpa [#allocation3], 0  ;;  %s492_s24 = smov [#allocation2]   ;;  %s689_s0 = inlined_call_operand.vmem [shape: f32[24,128], index: 0, kind: input, shape index: {}]   ;;  %s690_s1 = inlined_call_operand.vmem [shape: f32[1,128], index: 1, kind: input, shape index: {}]   ;;  %s691_s2 = inlined_call_operand.vmem [shape: f32[1,128], index: 2, kind: input, shape index: {}]   ;;  %s692_s3 = inlined_call_operand.vmem [shape: f32[128,128], index: 3, kind: input, shape index: {}]   ;;  %s693_s4 = inlined_call_operand.vmem [shape: f32[1,128], index: 4, kind: input, shape index: {}]   ;;  %s694_s5 = inlined_call_operand.hbm [shape: f32[128,128], index: 5, kind: input, shape index: {}]   ;;  %s695_s6 = inlined_call_operand.vmem [shape: f32[1,128], index: 6, kind: input, shape index: {}]   ;;  %s696_s7 = inlined_call_operand.vmem [shape: f32[24,128], index: 7, kind: output, shape index: {}]  }
   0x1   :  { %s28_s25 = sshll.u32 %s492_s24, 4  ;;  %s29_s25 = int_to_ptr.vmem [resolvable:$true] %s28_s25 }
   0x2   :  { %s478_s26 = scalar_lea.vmem %s29_s25, 2048  ;;  %p483_p1 = scmp.lt.s32.totalorder %s29_s25, %s29_s25 }
   0x3   :  { %p479_p0 = scmp.ne.s32.totalorder %s29_s25, %s478_s26  ;;  %p484_p2 = scmp.lt.s32.totalorder %s478_s26, %s478_s26 }
   0x5   :  { %p485_p3 = por %p484_p2, %p483_p1 }
   0x7   :  { %p486_p4 = pnand %p485_p3, %p479_p0 }
   0x9   :  { %489 = shalt.err (!%p486_p4)
}
   0xa   :  { %s493_s27 = smov 128   ;;  %s494_s28 = smov 8  }
   0xb   :  { %34 = dma.hbm_to_vmem [thread:$0]  %s694_s5, 2048, %s29_s25, [#allocation3], %s493_s27, %s493_s27, %s494_s28  }
   0xc   :  { %490 = dma.done.wait [#allocation3], 2048  }
   0xd   :  { %491 = vsyncadd [#allocation3], 4294965248  ;;  %v40_v0 = vld [vmem:[%s689_s0] sm:$0xff]  ;;  %v42_v1 = vld [vmem:[%s689_s0 + $0x10] sm:$0xff]  ;;  %v495_v4 = vmov 0.0   ;;  %vm496_vm0 = vmmov 0  }
   0xe   :  { %43 = vadd.xlane.f32.xlu0 %v40_v0  ;;  %47 = vadd.xlane.f32.xlu1 %v42_v1  ;;  %v41_v2 = vld [vmem:[%s689_s0 + $0x8] sm:$0xff]  ;;  %v112_v3 = vld [vmem:[%s692_s3 + $0x78] sm:$0xff]  ;;  %v111_v5 = vld [vmem:[%s692_s3 + $0x70] sm:$0xff] }
   0xf   :  { %371 = vmatprep.subr.mxu0 %v495_v4  ;;  %412 = vmatprep.subr.mxu1 %v495_v4  ;;  %v110_v6 = vld [vmem:[%s692_s3 + $0x68] sm:$0xff]  ;;  %v109_v7 = vld [vmem:[%s692_s3 + $0x60] sm:$0xff]  ;;  %v108_v20 = vld [vmem:[%s692_s3 + $0x58] sm:$0xff] }
  0x10   :  { %372 = vmatpush3.msra.mxu0 %v112_v3  ;;  %v107_v21 = vld [vmem:[%s692_s3 + $0x50] sm:$0xff]  ;;  %v106_v22 = vld [vmem:[%s692_s3 + $0x48] sm:$0xff]  ;;  %v105_v23 = vld [vmem:[%s692_s3 + $0x40] sm:$0xff]  ;;  %403 = vmatprep.mubr.msk.f32.mxu0 %vm496_vm0, %v495_v4 }
  0x11   :  { %373 = vmatprep.subr.mxu0 %v495_v4  ;;  %v104_v24 = vld [vmem:[%s692_s3 + $0x38] sm:$0xff]  ;;  %v103_v25 = vld [vmem:[%s692_s3 + $0x30] sm:$0xff]  ;;  %v102_v26 = vld [vmem:[%s692_s3 + $0x28] sm:$0xff]  ;;  %444 = vmatprep.mubr.msk.f32.mxu1 %vm496_vm0, %v495_v4 }
  0x12   :  { %45 = vadd.xlane.f32.xlu0 %v41_v2  ;;  %374 = vmatpush3.msra.mxu0 %v111_v5  ;;  %v101_v27 = vld [vmem:[%s692_s3 + $0x20] sm:$0xff]  ;;  %v100_v28 = vld [vmem:[%s692_s3 + $0x18] sm:$0xff]  ;;  %v99_v29 = vld [vmem:[%s692_s3 + $0x10] sm:$0xff] }
  0x13   :  { %375 = vmatprep.subr.mxu0 %v495_v4  ;;  %v98_v30 = vld [vmem:[%s692_s3 + $0x8] sm:$0xff]  ;;  %v97_v31 = vld [vmem:[%s692_s3] sm:$0xff]  ;;  %v230_v32 = vld [vmem:[#allocation2 + $0x78] sm:$0xff] }
  0x14   :  { %376 = vmatpush3.msra.mxu0 %v110_v6  ;;  %v229_v33 = vld [vmem:[#allocation2 + $0x70] sm:$0xff]  ;;  %413 = vmatpush3.msra.mxu1 %v230_v32  ;;  %v228_v34 = vld [vmem:[#allocation2 + $0x68] sm:$0xff]  ;;  %v227_v35 = vld [vmem:[#allocation2 + $0x60] sm:$0xff] }
  0x15   :  { %377 = vmatprep.subr.mxu0 %v495_v4  ;;  %414 = vmatprep.subr.mxu1 %v495_v4  ;;  %v329_v46 = vld [vmem:[%s690_s1] ss:$0 sm:$0xff]  ;;  %v226_v59 = vld [vmem:[#allocation2 + $0x58] sm:$0xff]  ;;  %v225_v60 = vld [vmem:[#allocation2 + $0x50] sm:$0xff] }
  0x16   :  { %378 = vmatpush3.msra.mxu0 %v109_v7  ;;  %415 = vmatpush3.msra.mxu1 %v229_v33  ;;  %v330_v48 = vld [vmem:[%s691_s2] ss:$0 sm:$0xff]  ;;  %v224_v61 = vld [vmem:[#allocation2 + $0x48] sm:$0xff]  ;;  %v222_v63 = vld [vmem:[#allocation2 + $0x38] sm:$0xff] }
  0x17   :  { %379 = vmatprep.subr.mxu0 %v495_v4  ;;  %416 = vmatprep.subr.mxu1 %v495_v4  ;;  %v223_v62 = vld [vmem:[#allocation2 + $0x40] sm:$0xff]  ;;  %v218_v3 = vld [vmem:[#allocation2 + $0x18] sm:$0xff]  ;;  %v217_v5 = vld [vmem:[#allocation2 + $0x10] sm:$0xff] }
  0x18   :  { %380 = vmatpush3.msra.mxu0 %v108_v20  ;;  %417 = vmatpush3.msra.mxu1 %v228_v34  ;;  %v216_v6 = vld [vmem:[#allocation2 + $0x8] sm:$0xff]  ;;  %v215_v7 = vld [vmem:[#allocation2] sm:$0xff] }
  0x19   :  { %381 = vmatprep.subr.mxu0 %v495_v4  ;;  %418 = vmatprep.subr.mxu1 %v495_v4  ;;  %v332_v33 = vld [vmem:[%s695_s6] ss:$0 sm:$0xff] }
  0x1a   :  { %382 = vmatpush3.msra.mxu0 %v107_v21  ;;  %419 = vmatpush3.msra.mxu1 %v227_v35 }
  0x1b   :  { %383 = vmatprep.subr.mxu0 %v495_v4  ;;  %420 = vmatprep.subr.mxu1 %v495_v4 }
  0x1c   :  { %384 = vmatpush3.msra.mxu0 %v106_v22  ;;  %421 = vmatpush3.msra.mxu1 %v226_v59 }
  0x1d   :  { %385 = vmatprep.subr.mxu0 %v495_v4  ;;  %422 = vmatprep.subr.mxu1 %v495_v4 }
  0x1e   :  { %386 = vmatpush3.msra.mxu0 %v105_v23  ;;  %423 = vmatpush3.msra.mxu1 %v225_v60 }
  0x1f   :  { %387 = vmatprep.subr.mxu0 %v495_v4  ;;  %424 = vmatprep.subr.mxu1 %v495_v4 }
  0x20   :  { %388 = vmatpush3.msra.mxu0 %v104_v24  ;;  %425 = vmatpush3.msra.mxu1 %v224_v61 }
  0x21   :  { %389 = vmatprep.subr.mxu0 %v495_v4  ;;  %426 = vmatprep.subr.mxu1 %v495_v4 }
  0x22   :  { %390 = vmatpush3.msra.mxu0 %v103_v25  ;;  %427 = vmatpush3.msra.mxu1 %v223_v62 }
  0x23   :  { %391 = vmatprep.subr.mxu0 %v495_v4  ;;  %428 = vmatprep.subr.mxu1 %v495_v4 }
  0x24   :  { %392 = vmatpush3.msra.mxu0 %v102_v26  ;;  %429 = vmatpush3.msra.mxu1 %v222_v63 }
  0x25   :  { %393 = vmatprep.subr.mxu0 %v495_v4  ;;  %430 = vmatprep.subr.mxu1 %v495_v4 }
  0x26   :  { %394 = vmatpush3.msra.mxu0 %v101_v27 }
  0x27   :  { %395 = vmatprep.subr.mxu0 %v495_v4 }
  0x28   :  { %396 = vmatpush3.msra.mxu0 %v100_v28 }
  0x29   :  { %397 = vmatprep.subr.mxu0 %v495_v4 }
  0x2a   :  { %398 = vmatpush3.msra.mxu0 %v99_v29 }
  0x2b   :  { %399 = vmatprep.subr.mxu0 %v495_v4 }
  0x2c   :  { %400 = vmatpush3.msra.mxu0 %v98_v30 }
  0x2d   :  { %401 = vmatprep.subr.mxu0 %v495_v4 }
  0x2e   :  { %402 = vmatpush3.msra.mxu0 %v97_v31 }
  0x97   :  { %v44_v8 = vpop.xlane.xlu0 %43  ;;  %v48_v9 = vpop.xlane.xlu1 %47 }
  0x98   :  { %v50_v10 = vmul.f32 0.0078125, %v44_v8  ;;  %v52_v11 = vmul.f32 0.0078125, %v48_v9  ;;  %v331_v8 = vld [vmem:[%s693_s4] ss:$0 sm:$0xff] }
  0x9a   :  { %v567_v12 = vsub.f32 %v40_v0, %v50_v10  ;;  %v569_v13 = vsub.f32 %v42_v1, %v52_v11  ;;  %v221_v0 = vld [vmem:[#allocation2 + $0x30] sm:$0xff]  ;;  %v220_v1 = vld [vmem:[#allocation2 + $0x28] sm:$0xff] }
  0x9b   :  { %v46_v14 = vpop.xlane.xlu0 %45  ;;  %431 = vmatpush3.msra.mxu1 %v221_v0 }
  0x9c   :  { %v51_v15 = vmul.f32 0.0078125, %v46_v14  ;;  %v56_v16 = vmul.f32 %v567_v12, %v567_v12  ;;  %v58_v18 = vmul.f32 %v569_v13, %v569_v13  ;;  %432 = vmatprep.subr.mxu1 %v495_v4 }
  0x9d   :  { %433 = vmatpush3.msra.mxu1 %v220_v1 }
  0x9e   :  { %v573_v17 = vsub.f32 %v41_v2, %v51_v15  ;;  %59 = vadd.xlane.f32.xlu1 %v56_v16  ;;  %434 = vmatprep.subr.mxu1 %v495_v4  ;;  %v219_v2 = vld [vmem:[#allocation2 + $0x20] sm:$0xff] }
  0x9f   :  { %435 = vmatpush3.msra.mxu1 %v219_v2 }
  0xa0   :  { %v57_v19 = vmul.f32 %v573_v17, %v573_v17  ;;  %436 = vmatprep.subr.mxu1 %v495_v4 }
  0xa1   :  { %437 = vmatpush3.msra.mxu1 %v218_v3 }
  0xa2   :  { %63 = vadd.xlane.f32.xlu1 %v58_v18  ;;  %61 = vadd.xlane.f32.xlu0 %v57_v19 }
  0xa3   :  { %438 = vmatprep.subr.mxu1 %v495_v4 }
  0xa4   :  { %439 = vmatpush3.msra.mxu1 %v217_v5 }
  0xa5   :  { %440 = vmatprep.subr.mxu1 %v495_v4 }
  0xa6   :  { %441 = vmatpush3.msra.mxu1 %v216_v6 }
  0xa7   :  { %442 = vmatprep.subr.mxu1 %v495_v4 }
  0xa8   :  { %443 = vmatpush3.msra.mxu1 %v215_v7 }
 0x127   :  { %v60_v36 = vpop.xlane.xlu1 %59 }
 0x128   :  { %v65_v37 = vmul.f32 0.0078125, %v60_v36 }
 0x12a   :  { %v68_v38 = vadd.f32 1e-05, %v65_v37 }
 0x12b   :  { %v64_v39 = vpop.xlane.xlu1 %63  ;;  %v62_v40 = vpop.xlane.xlu0 %61 }
 0x12c   :  { %458 = vrsqrt.f32 %v68_v38  ;;  %v67_v41 = vmul.f32 0.0078125, %v64_v39  ;;  %v66_v42 = vmul.f32 0.0078125, %v62_v40 }
 0x12e   :  { %v70_v43 = vadd.f32 1e-05, %v67_v41  ;;  %v69_v44 = vadd.f32 1e-05, %v66_v42 }
 0x130   :  { %460 = vrsqrt.f32 %v70_v43 }
 0x131   :  { %462 = vrsqrt.f32 %v69_v44 }
 0x139   :  { %v459_v45 = vpop.eup %458 }
 0x13a   :  { %v74_v47 = vmul.f32 %v459_v45, %v567_v12 }
 0x13c   :  { %v84_v49 = vmul.f32 %v329_v46, %v74_v47 }
 0x13d   :  { %v461_v50 = vpop.eup %460 }
 0x13e   :  { %v463_v51 = vpop.eup %462  ;;  %v641_v52 = vadd.f32 %v330_v48, %v84_v49  ;;  %v76_v54 = vmul.f32 %v461_v50, %v569_v13 }
 0x13f   :  { %v75_v53 = vmul.f32 %v463_v51, %v573_v17 }
 0x140   :  { %404 = vmatmul.mubr.f32.vlgmr.msra.gmra.mxu0 %v641_v52  ;;  %v86_v57 = vmul.f32 %v329_v46, %v76_v54 }
 0x141   :  { %406 = vmatprep.mubr.msk.f32.mxu0 %vm496_vm0, %v495_v4  ;;  %v85_v55 = vmul.f32 %v329_v46, %v75_v53 }
 0x142   :  { %v653_v58 = vadd.f32 %v330_v48, %v86_v57 }
 0x143   :  { %v648_v56 = vadd.f32 %v330_v48, %v85_v55 }
 0x145   :  { %407 = vmatmul.mubr.f32.gmra.mxu0 %v648_v56 }
 0x146   :  { %409 = vmatprep.mubr.msk.f32.mxu0 %vm496_vm0, %v495_v4 }
 0x149   :  { %410 = vmatmul.mubr.f32.gmra.mxu0 %v653_v58 }
 0x200   :  { %v186_v9 = vpop.f32.mrf.mxu0 }
 0x201   :  { %v187_v10 = vadd.f32 %v331_v8, %v186_v9 }
 0x202   :  { %v405_v11 = vpop.f32.mrf.mxu0 }
 0x203   :  { %v203_v12 = vmul.f32 0.70710677, %v187_v10  ;;  %v200_v22 = vmul.f32 0.5, %v187_v10 }
 0x205   :  { %464 = verf.f32 %v203_v12  ;;  %v191_v13 = vpop.f32.mrf.mxu0 }
 0x206   :  { %v192_v14 = vadd.f32 %v331_v8, %v191_v13 }
 0x207   :  { %v408_v15 = vpop.f32.mrf.mxu0 }
 0x208   :  { %v204_v16 = vmul.f32 0.70710677, %v192_v14  ;;  %v201_v26 = vmul.f32 0.5, %v192_v14 }
 0x209   :  { %v196_v17 = vpop.f32.mrf.mxu0 }
 0x20a   :  { %466 = verf.f32 %v204_v16  ;;  %v197_v18 = vadd.f32 %v331_v8, %v196_v17 }
 0x20b   :  { %v411_v19 = vpop.f32.mrf.mxu0 }
 0x20c   :  { %v205_v20 = vmul.f32 0.70710677, %v197_v18  ;;  %v202_v30 = vmul.f32 0.5, %v197_v18 }
 0x20e   :  { %468 = verf.f32 %v205_v20 }
 0x212   :  { %v465_v21 = vpop.eup %464 }
 0x213   :  { %v209_v23 = vadd.f32 1.0, %v465_v21 }
 0x215   :  { %v212_v24 = vmul.f32 %v209_v23, %v200_v22 }
 0x217   :  { %v467_v25 = vpop.eup %466  ;;  %445 = vmatmul.mubr.f32.vlgmr.msra.gmra.mxu1 %v212_v24 }
 0x218   :  { %447 = vmatprep.mubr.msk.f32.mxu1 %vm496_vm0, %v495_v4  ;;  %v210_v27 = vadd.f32 1.0, %v467_v25 }
 0x21a   :  { %v213_v28 = vmul.f32 %v210_v27, %v201_v26 }
 0x21b   :  { %v469_v29 = vpop.eup %468 }
 0x21c   :  { %448 = vmatmul.mubr.f32.gmra.mxu1 %v213_v28  ;;  %v211_v31 = vadd.f32 1.0, %v469_v29 }
 0x21d   :  { %450 = vmatprep.mubr.msk.f32.mxu1 %vm496_vm0, %v495_v4 }
 0x21e   :  { %v214_v32 = vmul.f32 %v211_v31, %v202_v30 }
 0x220   :  { %451 = vmatmul.mubr.f32.gmra.mxu1 %v214_v32 }
 0x2d7   :  { %v304_v34 = vpop.f32.mrf.mxu1 }
 0x2d8   :  { %v305_v35 = vadd.f32 %v332_v33, %v304_v34 }
 0x2d9   :  { %v446_v36 = vpop.f32.mrf.mxu1 }
 0x2da   :  { %v318_v37 = vadd.f32 %v305_v35, %v641_v52 }
 0x2dc   :  { %321 = vst [vmem:[%s696_s7] sm:$0xff] %v318_v37  ;;  %v309_v38 = vpop.f32.mrf.mxu1 }
 0x2dd   :  { %v310_v39 = vadd.f32 %v332_v33, %v309_v38 }
 0x2de   :  { %v449_v40 = vpop.f32.mrf.mxu1 }
 0x2df   :  { %v319_v4 = vadd.f32 %v310_v39, %v648_v56 }
 0x2e0   :  { %v314_v41 = vpop.f32.mrf.mxu1 }
 0x2e1   :  { %322 = vst [vmem:[%s696_s7 + $0x8] sm:$0xff] %v319_v4  ;;  %v315_v42 = vadd.f32 %v332_v33, %v314_v41 }
 0x2e2   :  { %v452_v43 = vpop.f32.mrf.mxu1 }
 0x2e3   :  { %v320_v44 = vadd.f32 %v315_v42, %v653_v58 }
 0x2e5   :  { %323 = vst [vmem:[%s696_s7 + $0x10] sm:$0xff] %v320_v44 }
 0x2e6   :  { %328 = vsyncpa [#allocation3], 1 }

</bundles_post_ra>
